<compile_context>
chip_gen: v5e
topology: v5e:2x2
jax: 0.10.0
libtpu: 0.0.40
codegen_flags: <defaults>
</compile_context>

<pallas_src>
import functools

import jax
import jax.numpy as jnp
import numpy as np
from jax.experimental import pallas as pl
from jax.experimental.pallas import tpu as pltpu

IGNORE_INDEX = 255
SMOOTH_FACTOR = 0.05   # SoftCrossEntropyLoss(smooth_factor=0.05)
DICE_SMOOTH = 0.05     # DiceLoss(smooth=0.05)
DICE_EPS = 1e-7

MAX_TILE_HW = 4096     # lanes per pixel tile (multiple of 128); sweep 2048-8192
STAT_LANES = 128       # lane-dense output width; only 5 columns are meaningful


def _round_up(x, m):
    return ((x + m - 1) // m) * m


def _loss_stats_kernel(logits_ref, labels_ref, out_ref, acc_ref, *,
                       ignore_index):
    t = pl.program_id(1)

    @pl.when(t == 0)
    def _():                                    # new batch element -> reset acc
        acc_ref[...] = jnp.zeros_like(acc_ref)

    x = logits_ref[0].astype(jnp.float32)       # (C, T) -- cast per tile
    lab = labels_ref[0]                         # (1, T) int32

    # ---- single-exp-pass softmax / log-softmax over the class axis --------
    m = jnp.max(x, axis=0, keepdims=True)       # (1, T)
    z = x - m
    e = jnp.exp(z)                              # the only exp pass (C*T EUP)
    s = jnp.sum(e, axis=0, keepdims=True)       # (1, T)
    logp = z - jnp.log(s)                       # log-softmax
    inv_s = pl.reciprocal(s, approx=True)       # EUP approx reciprocal
    inv_s = inv_s * (2.0 - s * inv_s)           # one Newton step (VPU) -> ~f32
    p = e * inv_s                               # softmax probs (no 2nd exp)

    valid = lab != ignore_index                 # (1, T)
    validf = valid.astype(jnp.float32)

    cls_idx = jax.lax.broadcasted_iota(jnp.int32, x.shape, 0)   # (C, T)
    onehot = jnp.where(lab == cls_idx, 1.0, 0.0) * validf       # (C, T)

    neg_logp = -logp
    p_masked = p * validf

    # per-class pixel reductions for this tile -> (C, 1)
    inter = jnp.sum(p_masked * onehot, axis=1, keepdims=True)   # dice numerator
    psum = jnp.sum(p_masked, axis=1, keepdims=True)             # sum of probs
    tsum = jnp.sum(onehot, axis=1, keepdims=True)               # target sum
    nll_c = jnp.sum(onehot * neg_logp, axis=1, keepdims=True)   # per-class NLL
    smth_c = jnp.sum(neg_logp * validf, axis=1, keepdims=True)  # smoothing term

    # accumulate into VMEM scratch (single-vreg RMWs; zero HBM traffic here)
    acc_ref[:, 0:1] += inter
    acc_ref[:, 1:2] += psum
    acc_ref[:, 2:3] += tsum
    acc_ref[:, 3:4] += nll_c
    acc_ref[:, 4:5] += smth_c

    # one lane-dense (C, 128) store per batch element
    @pl.when(t == pl.num_programs(1) - 1)
    def _():
        out_ref[0] = acc_ref[...]


def _compute_stats(logits, labels, ignore_index=IGNORE_INDEX):
    n, c, h, w = logits.shape
    hw = h * w

    # Keep logits in their native dtype (bf16 stays bf16 -> half the DMA bytes);
    # the f32 cast happens per tile inside the kernel.
    logits3 = logits.reshape(n, c, hw)
    # NOTE: labels could be shipped as uint8/int16 to shave more HBM bytes;
    # int32 is kept here for lowering safety.
    labels3 = labels.reshape(n, 1, hw).astype(jnp.int32)

    tile_hw = min(MAX_TILE_HW, _round_up(hw, 128))
    hw_padded = _round_up(hw, tile_hw)
    if hw_padded != hw:
        pad = hw_padded - hw
        logits3 = jnp.pad(logits3, ((0, 0), (0, 0), (0, pad)))
        labels3 = jnp.pad(labels3, ((0, 0), (0, 0), (0, pad)),
                          constant_values=ignore_index)  # padded px -> ignored
    num_t = hw_padded // tile_hw

    kernel = functools.partial(_loss_stats_kernel, ignore_index=ignore_index)

    cost = pl.CostEstimate(
        flops=12 * n * c * hw_padded,
        transcendentals=n * hw_padded * (c + 2),
        bytes_accessed=(logits3.size * logits3.dtype.itemsize
                        + labels3.size * 4 + n * c * STAT_LANES * 4),
    )

    stats = pl.pallas_call(
        kernel,
        out_shape=jax.ShapeDtypeStruct((n, c, STAT_LANES), jnp.float32),
        grid_spec=pltpu.PrefetchScalarGridSpec(
            num_scalar_prefetch=0,
            grid=(n, num_t),
            in_specs=[
                pl.BlockSpec((1, c, tile_hw), lambda b, t: (b, 0, t)),
                pl.BlockSpec((1, 1, tile_hw), lambda b, t: (b, 0, t)),
            ],
            out_specs=pl.BlockSpec((1, c, STAT_LANES), lambda b, t: (b, 0, 0)),
            scratch_shapes=[pltpu.VMEM((c, STAT_LANES), jnp.float32)],
        ),
        compiler_params=pltpu.CompilerParams(
            # Per-batch partial-stat outputs -> batch axis can shard across
            # TensorCores (v7x megacore); the pixel axis accumulates in scratch.
            dimension_semantics=("parallel", "arbitrary"),
            vmem_limit_bytes=32 * 1024 * 1024,
        ),
        cost_estimate=cost,
    )(logits3, labels3)
    return stats


def _stats_to_joint_loss(stats, n_pix, c):
    inter = jnp.sum(stats[:, :, 0], axis=0)          # (C,)
    psum = jnp.sum(stats[:, :, 1], axis=0)
    tsum = jnp.sum(stats[:, :, 2], axis=0)
    card = psum + tsum
    nll_sum = jnp.sum(stats[:, :, 3])
    smooth_sum = jnp.sum(stats[:, :, 4])

    nll_mean = nll_sum / n_pix                       # mean over ALL pixels
    smooth_mean = smooth_sum / n_pix
    sce = (1.0 - SMOOTH_FACTOR) * nll_mean + (SMOOTH_FACTOR / c) * smooth_mean

    dice_score = (2.0 * inter + DICE_SMOOTH) / jnp.maximum(card + DICE_SMOOTH,
                                                           DICE_EPS)
    dice_loss = (1.0 - dice_score) * (tsum > 0).astype(jnp.float32)
    return sce + jnp.mean(dice_loss)


@jax.jit
def joint_loss(logits, labels):
    """JointLoss(SoftCrossEntropyLoss(0.05, 255), DiceLoss(0.05, 255), 1.0, 1.0)."""
    n, c, h, w = logits.shape
    stats = _compute_stats(logits, labels)
    return _stats_to_joint_loss(stats, float(n * h * w), c)


def cggl_net_loss(logits, labels, training=False):
    """CGGLNetLoss.forward: main + (aux2 + aux3 + aux4) when training w/ 4 logits."""
    if training and isinstance(logits, (tuple, list)) and len(logits) == 4:
        # NOTE: if the aux heads were pre-stacked on a leading axis they could
        # share a single pallas_call (per-head partials are already separated
        # in the (N, C, 128) stats output); kept as separate calls to avoid an
        # HBM concat copy of all four logit tensors.
        logit_main, aux2, aux3, aux4 = logits
        return (joint_loss(logit_main, labels)
                + joint_loss(aux2, labels)
                + joint_loss(aux3, labels)
                + joint_loss(aux4, labels))
    return joint_loss(logits, labels)


# ------------------------- pure-JAX reference -------------------------------
def _joint_loss_ref(logits, labels):
    n, c, h, w = logits.shape
    logp = jax.nn.log_softmax(logits.astype(jnp.float32), axis=1)
    valid = labels != IGNORE_INDEX
    validf = valid.astype(jnp.float32)
    tgt = jnp.where(valid, labels, 0)
    oh = jax.nn.one_hot(tgt, c, axis=1) * validf[:, None]
    nll = -jnp.sum(oh * logp, axis=1)
    smooth = -jnp.sum(logp, axis=1) * validf
    sce = (1.0 - SMOOTH_FACTOR) * nll.mean() + (SMOOTH_FACTOR / c) * smooth.mean()

    p = jnp.exp(logp).reshape(n, c, -1) * validf.reshape(n, 1, -1)
    t = oh.reshape(n, c, -1)
    inter = jnp.sum(p * t, axis=(0, 2))
    card = jnp.sum(p + t, axis=(0, 2))
    score = (2.0 * inter + DICE_SMOOTH) / jnp.maximum(card + DICE_SMOOTH, DICE_EPS)
    dloss = (1.0 - score) * (jnp.sum(t, axis=(0, 2)) > 0).astype(jnp.float32)
    return sce + dloss.mean()


if __name__ == "__main__":
    key = jax.random.PRNGKey(0)
    k1, k2, k3, k4, k5, k6 = jax.random.split(key, 6)

    # --- case 1: H*W a multiple of 128 (no padding path) ---------------------
    N, C, H, W = 2, 6, 16, 16
    logits = jax.random.normal(k1, (N, C, H, W), dtype=jnp.float32)
    labels = jax.random.randint(k2, (N, H, W), 0, C, dtype=jnp.int32)
    ignore_mask = jax.random.uniform(k3, (N, H, W)) < 0.1
    labels = jnp.where(ignore_mask, IGNORE_INDEX, labels)

    loss = jax.block_until_ready(cggl_net_loss(logits, labels))
    ref = jax.block_until_ready(_joint_loss_ref(logits, labels))
    # tolerance covers the approx-EUP reciprocal (refined with one Newton step)
    np.testing.assert_allclose(np.asarray(loss), np.asarray(ref),
                               rtol=1e-4, atol=1e-4)

    # --- case 2: H*W not a multiple of 128 (exercises the padding path) -----
    H2, W2 = 12, 12
    logits2 = jax.random.normal(k4, (N, C, H2, W2), dtype=jnp.float32)
    labels2 = jax.random.randint(k5, (N, H2, W2), 0, C, dtype=jnp.int32)
    labels2 = jnp.where(jax.random.uniform(k6, (N, H2, W2)) < 0.1,
                        IGNORE_INDEX, labels2)
    loss2 = jax.block_until_ready(cggl_net_loss(logits2, labels2))
    ref2 = jax.block_until_ready(_joint_loss_ref(logits2, labels2))
    np.testing.assert_allclose(np.asarray(loss2), np.asarray(ref2),
                               rtol=1e-4, atol=1e-4)

    # --- case 3: training branch (main + 3 aux heads) ------------------------
    loss_train = jax.block_until_ready(
        cggl_net_loss((logits, logits, logits, logits), labels, training=True))
    np.testing.assert_allclose(np.asarray(loss_train), 4.0 * np.asarray(ref),
                               rtol=1e-4, atol=4e-4)

    print("KERNEL_OK")
</pallas_src>

<mosaic_0001>
module attributes {stable_mosaic.version = 11 : i64} {
  func.func @_loss_stats_kernel(%arg0: i32, %arg1: i32, %arg2: memref<1x6x256xf32, #tpu.memory_space<vmem>>, %arg3: memref<1x1x256xi32, #tpu.memory_space<vmem>>, %arg4: memref<1x6x128xf32, #tpu.memory_space<vmem>>, %arg5: memref<6x128xf32, #tpu.memory_space<vmem>>) attributes {dimension_semantics = [#tpu.dimension_semantics<parallel>, #tpu.dimension_semantics<arbitrary>], iteration_bounds = array<i64: 2, 1>, scalar_prefetch = 0 : i64, scratch_operands = 1 : i64, tpu.core_type = #tpu.core_type<tc>, window_params = [{transform_indices = @transform_0, window_bounds = array<i64: 1, 6, 256>}, {transform_indices = @transform_1, window_bounds = array<i64: 1, 1, 256>}, {transform_indices = @transform_2, window_bounds = array<i64: 1, 6, 128>}]} {
    %c0_i32 = arith.constant 0 : i32
    %0 = arith.cmpi eq, %arg1, %c0_i32 : i32
    %1 = arith.extui %0 : i1 to i32
    %c0_i32_0 = arith.constant 0 : i32
    %2 = arith.cmpi ne, %1, %c0_i32_0 : i32
    scf.if %2 {
      %cst_34 = arith.constant 0.000000e+00 : f32
      %72 = vector.broadcast %cst_34 : f32 to vector<6x128xf32>
      %c0_35 = arith.constant 0 : index
      %c0_36 = arith.constant 0 : index
      %73 = vector.load %arg5[%c0_35, %c0_36] : memref<6x128xf32, #tpu.memory_space<vmem>>, vector<6x128xf32>
      tpu.vector_store %arg5[%c0_35, %c0_36], %72 {strides = array<i32>} : memref<6x128xf32, #tpu.memory_space<vmem>>, vector<6x128xf32>,
    } else {
    }
    %c0 = arith.constant 0 : index
    %c0_1 = arith.constant 0 : index
    %c0_2 = arith.constant 0 : index
    %3 = vector.load %arg2[%c0, %c0_1, %c0_2] : memref<1x6x256xf32, #tpu.memory_space<vmem>>, vector<1x6x256xf32>
    %4 = vector.shape_cast %3 : vector<1x6x256xf32> to vector<6x256xf32>
    %c0_3 = arith.constant 0 : index
    %c0_4 = arith.constant 0 : index
    %c0_5 = arith.constant 0 : index
    %5 = vector.load %arg3[%c0_3, %c0_4, %c0_5] : memref<1x1x256xi32, #tpu.memory_space<vmem>>, vector<1x1x256xi32>
    %6 = vector.shape_cast %5 : vector<1x1x256xi32> to vector<1x256xi32>
    %cst = arith.constant dense<0xFF800000> : vector<256xf32>
    %7 = vector.multi_reduction <maximumf>, %4, %cst [0] : vector<6x256xf32> to vector<256xf32>
    %8 = vector.shape_cast %7 : vector<256xf32> to vector<1x256xf32>
    %9 = vector.broadcast %8 : vector<1x256xf32> to vector<6x256xf32>
    %10 = arith.subf %4, %9 : vector<6x256xf32>
    %11 = math.exp %10 : vector<6x256xf32>
    %cst_6 = arith.constant dense<0.000000e+00> : vector<256xf32>
    %12 = vector.multi_reduction <add>, %11, %cst_6 [0] : vector<6x256xf32> to vector<256xf32>
    %13 = vector.shape_cast %12 : vector<256xf32> to vector<1x256xf32>
    %14 = math.log %13 : vector<1x256xf32>
    %15 = vector.broadcast %14 : vector<1x256xf32> to vector<6x256xf32>
    %16 = arith.subf %10, %15 : vector<6x256xf32>
    %17 = tpu.reciprocal %13 {approx = true} : vector<1x256xf32> -> vector<1x256xf32>
    %18 = arith.mulf %13, %17 : vector<1x256xf32>
    %cst_7 = arith.constant 2.000000e+00 : f32
    %19 = vector.broadcast %cst_7 : f32 to vector<1x256xf32>
    %20 = arith.subf %19, %18 : vector<1x256xf32>
    %21 = arith.mulf %17, %20 : vector<1x256xf32>
    %22 = vector.broadcast %21 : vector<1x256xf32> to vector<6x256xf32>
    %23 = arith.mulf %11, %22 : vector<6x256xf32>
    %c255_i32 = arith.constant 255 : i32
    %24 = vector.broadcast %c255_i32 : i32 to vector<1x256xi32>
    %25 = arith.cmpi ne, %6, %24 : vector<1x256xi32>
    %26 = arith.extui %25 : vector<1x256xi1> to vector<1x256xi32>
    %27 = arith.sitofp %26 : vector<1x256xi32> to vector<1x256xf32>
    %28 = tpu.iota {dimensions = array<i32: 0>} : vector<6x256xi32>
    %29 = vector.broadcast %6 : vector<1x256xi32> to vector<6x256xi32>
    %30 = arith.cmpi eq, %29, %28 : vector<6x256xi32>
    %cst_8 = arith.constant 1.000000e+00 : f32
    %cst_9 = arith.constant 0.000000e+00 : f32
    %31 = vector.broadcast %cst_8 : f32 to vector<6x256xf32>
    %32 = vector.broadcast %cst_9 : f32 to vector<6x256xf32>
    %33 = arith.select %30, %31, %32 : vector<6x256xi1>, vector<6x256xf32>
    %34 = vector.broadcast %27 : vector<1x256xf32> to vector<6x256xf32>
    %35 = arith.mulf %33, %34 : vector<6x256xf32>
    %cst_10 = arith.constant 0.000000e+00 : f32
    %36 = vector.broadcast %cst_10 : f32 to vector<6x256xf32>
    %37 = arith.subf %36, %16 : vector<6x256xf32>
    %38 = vector.broadcast %27 : vector<1x256xf32> to vector<6x256xf32>
    %39 = arith.mulf %23, %38 : vector<6x256xf32>
    %40 = arith.mulf %39, %35 : vector<6x256xf32>
    %cst_11 = arith.constant dense<0.000000e+00> : vector<6xf32>
    %41 = vector.multi_reduction <add>, %40, %cst_11 [1] : vector<6x256xf32> to vector<6xf32>
    %42 = vector.shape_cast %41 : vector<6xf32> to vector<6x1xf32>
    %cst_12 = arith.constant dense<0.000000e+00> : vector<6xf32>
    %43 = vector.multi_reduction <add>, %39, %cst_12 [1] : vector<6x256xf32> to vector<6xf32>
    %44 = vector.shape_cast %43 : vector<6xf32> to vector<6x1xf32>
    %cst_13 = arith.constant dense<0.000000e+00> : vector<6xf32>
    %45 = vector.multi_reduction <add>, %35, %cst_13 [1] : vector<6x256xf32> to vector<6xf32>
    %46 = vector.shape_cast %45 : vector<6xf32> to vector<6x1xf32>
    %47 = arith.mulf %35, %37 : vector<6x256xf32>
    %cst_14 = arith.constant dense<0.000000e+00> : vector<6xf32>
    %48 = vector.multi_reduction <add>, %47, %cst_14 [1] : vector<6x256xf32> to vector<6xf32>
    %49 = vector.shape_cast %48 : vector<6xf32> to vector<6x1xf32>
    %50 = vector.broadcast %27 : vector<1x256xf32> to vector<6x256xf32>
    %51 = arith.mulf %37, %50 : vector<6x256xf32>
    %cst_15 = arith.constant dense<0.000000e+00> : vector<6xf32>
    %52 = vector.multi_reduction <add>, %51, %cst_15 [1] : vector<6x256xf32> to vector<6xf32>
    %53 = vector.shape_cast %52 : vector<6xf32> to vector<6x1xf32>
    %c0_16 = arith.constant 0 : index
    %c0_17 = arith.constant 0 : index
    %54 = vector.load %arg5[%c0_16, %c0_17] : memref<6x128xf32, #tpu.memory_space<vmem>>, vector<6x1xf32>
    %55 = arith.addf %54, %42 : vector<6x1xf32>
    %c0_18 = arith.constant 0 : index
    %c0_19 = arith.constant 0 : index
    %56 = vector.load %arg5[%c0_18, %c0_19] : memref<6x128xf32, #tpu.memory_space<vmem>>, vector<6x1xf32>
    tpu.vector_store %arg5[%c0_18, %c0_19], %55 {strides = array<i32>} : memref<6x128xf32, #tpu.memory_space<vmem>>, vector<6x1xf32>,
    %c0_20 = arith.constant 0 : index
    %c1 = arith.constant 1 : index
    %57 = vector.load %arg5[%c0_20, %c1] : memref<6x128xf32, #tpu.memory_space<vmem>>, vector<6x1xf32>
    %58 = arith.addf %57, %44 : vector<6x1xf32>
    %c0_21 = arith.constant 0 : index
    %c1_22 = arith.constant 1 : index
    %59 = vector.load %arg5[%c0_21, %c1_22] : memref<6x128xf32, #tpu.memory_space<vmem>>, vector<6x1xf32>
    tpu.vector_store %arg5[%c0_21, %c1_22], %58 {strides = array<i32>} : memref<6x128xf32, #tpu.memory_space<vmem>>, vector<6x1xf32>,
    %c0_23 = arith.constant 0 : index
    %c2 = arith.constant 2 : index
    %60 = vector.load %arg5[%c0_23, %c2] : memref<6x128xf32, #tpu.memory_space<vmem>>, vector<6x1xf32>
    %61 = arith.addf %60, %46 : vector<6x1xf32>
    %c0_24 = arith.constant 0 : index
    %c2_25 = arith.constant 2 : index
    %62 = vector.load %arg5[%c0_24, %c2_25] : memref<6x128xf32, #tpu.memory_space<vmem>>, vector<6x1xf32>
    tpu.vector_store %arg5[%c0_24, %c2_25], %61 {strides = array<i32>} : memref<6x128xf32, #tpu.memory_space<vmem>>, vector<6x1xf32>,
    %c0_26 = arith.constant 0 : index
    %c3 = arith.constant 3 : index
    %63 = vector.load %arg5[%c0_26, %c3] : memref<6x128xf32, #tpu.memory_space<vmem>>, vector<6x1xf32>
    %64 = arith.addf %63, %49 : vector<6x1xf32>
    %c0_27 = arith.constant 0 : index
    %c3_28 = arith.constant 3 : index
    %65 = vector.load %arg5[%c0_27, %c3_28] : memref<6x128xf32, #tpu.memory_space<vmem>>, vector<6x1xf32>
    tpu.vector_store %arg5[%c0_27, %c3_28], %64 {strides = array<i32>} : memref<6x128xf32, #tpu.memory_space<vmem>>, vector<6x1xf32>,
    %c0_29 = arith.constant 0 : index
    %c4 = arith.constant 4 : index
    %66 = vector.load %arg5[%c0_29, %c4] : memref<6x128xf32, #tpu.memory_space<vmem>>, vector<6x1xf32>
    %67 = arith.addf %66, %53 : vector<6x1xf32>
    %c0_30 = arith.constant 0 : index
    %c4_31 = arith.constant 4 : index
    %68 = vector.load %arg5[%c0_30, %c4_31] : memref<6x128xf32, #tpu.memory_space<vmem>>, vector<6x1xf32>
    tpu.vector_store %arg5[%c0_30, %c4_31], %67 {strides = array<i32>} : memref<6x128xf32, #tpu.memory_space<vmem>>, vector<6x1xf32>,
    %c0_i32_32 = arith.constant 0 : i32
    %69 = arith.cmpi eq, %arg1, %c0_i32_32 : i32
    %70 = arith.extui %69 : i1 to i32
    %c0_i32_33 = arith.constant 0 : i32
    %71 = arith.cmpi ne, %70, %c0_i32_33 : i32
    scf.if %71 {
      %c0_34 = arith.constant 0 : index
      %c0_35 = arith.constant 0 : index
      %72 = vector.load %arg5[%c0_34, %c0_35] : memref<6x128xf32, #tpu.memory_space<vmem>>, vector<6x128xf32>
      %c0_36 = arith.constant 0 : index
      %c0_37 = arith.constant 0 : index
      %c0_38 = arith.constant 0 : index
      %73 = vector.load %arg4[%c0_36, %c0_37, %c0_38] : memref<1x6x128xf32, #tpu.memory_space<vmem>>, vector<1x6x128xf32>
      %74 = vector.shape_cast %73 : vector<1x6x128xf32> to vector<6x128xf32>
      %75 = vector.shape_cast %72 : vector<6x128xf32> to vector<1x6x128xf32>
      tpu.vector_store %arg4[%c0_36, %c0_37, %c0_38], %75 {strides = array<i32>} : memref<1x6x128xf32, #tpu.memory_space<vmem>>, vector<1x6x128xf32>,
    } else {
    }
    return
  }
  func.func @transform_0(%arg0: i32, %arg1: i32) -> (i32, i32, i32) {
    %c0_i32 = arith.constant 0 : i32
    %c0_i32_0 = arith.constant 0 : i32
    return %arg0, %c0_i32, %arg1 : i32, i32, i32
  }
  func.func @transform_1(%arg0: i32, %arg1: i32) -> (i32, i32, i32) {
    %c0_i32 = arith.constant 0 : i32
    %c0_i32_0 = arith.constant 0 : i32
    return %arg0, %c0_i32, %arg1 : i32, i32, i32
  }
  func.func @transform_2(%arg0: i32, %arg1: i32) -> (i32, i32, i32) {
    %c0_i32 = arith.constant 0 : i32
    %c0_i32_0 = arith.constant 0 : i32
    %c0_i32_1 = arith.constant 0 : i32
    return %arg0, %c0_i32, %c0_i32_0 : i32, i32, i32
  }
}

</mosaic_0001>

<bundles_post_ra>
// kernel: joint_loss.1
= control target key start
LH: loop header
LB: loop body
LE: loop exit
PB: predicated region body
PF: predicated region fallthrough
CT: control target
= control target key end

     0   :  { %s512_s9 = smov 0   ;;  %s514_s10 = smov 0   ;;  %s571_s0 = inlined_call_operand.vmem [shape: f32[2,6,256], index: 0, kind: input, shape index: {}]   ;;  %s572_s1 = inlined_call_operand.vmem [shape: s32[2,1,256], index: 1, kind: input, shape index: {}]   ;;  %s573_s2 = inlined_call_operand.vmem [shape: f32[2,6,128], index: 2, kind: output, shape index: {}]  }
   0x1   :  { %s516_s11 = smov 0  }
   0x2 LB: > { %s24_s12 = sadd.s32 1, %s490_s10  ;;  %p426_p0 = scmp.ge.s32.totalorder %s494_s11, 1  ;;  %s494_s11 = sphi %s516_s11, %s12_s11   ;;  %s490_s10 = sphi %s514_s10, %s575_s10   ;;  %s486_s9 = sphi %s512_s9, %s574_s9  }
   0x3   : > { %p26_p1 = scmp.ge.s32.totalorder %s24_s12, 2  ;;  %p147_p2 = scmp.lt.s32.totalorder %s494_s11, 3 }
   0x5   : > { %s577_s12 = smov (%p26_p1, %s24_s12), 0  ;;  %p148_p3 = pnand %p426_p0, %p147_p2 }
   0x6   : > { %p181_p4 = scmp.lt.s32.totalorder (!%p148_p3), %s486_s9, 1 }
   0x7   : > { %151 = sbr.rel (%p148_p3) target bundleno = 243 (0xf3), region = 28 }
   0xc   : > { %v496_v0 = vmov 0.0   ;;  %s579_s9 = smov (!%p181_p4, %s486_s9), 1  ;;  %vm211_vm0 = vcmask 1045504   ;;  %v265_v22 = vlaneseq  ;;  %vm317_vm4 = vcmask 5120  }
   0xd   : > { %207 = vst [vmem:[#allocation2] sm:$0x3f] %v496_v0  ;;  %s434_s13 = sshll.u32 %s579_s9, 4  ;;  %s429_s17 = sshll.u32 %s579_s9, 1  ;;  %vm321_vm5 = vcmask 13320   ;;  %vm325_vm6 = vcmask 21520  }
   0xe   : > { %s188_s16 = scalar_lea.vmem %s571_s0, %s434_s13  ;;  %s197_s20 = scalar_lea.vmem %s572_s1, %s429_s17  ;;  %v266_v26 = vshrl.u32 %v265_v22, 7  ;;  %vm329_vm7 = vcmask 29720   ;;  %vm333_vm8 = vcmask 37920  }
   0xf   : > { %v208_v1 = vld [vmem:[%s188_s16] sm:$0x3f]  ;;  %v209_v2 = vld [vmem:[%s188_s16 + $0x8] sm:$0x3f]  ;;  %s430_s21 = sshll.u32 %s579_s9, 3 }
  0x10   : > { %v212_v3 = vsel %vm211_vm0, %v208_v1, -inf  ;;  %v219_v4 = vsel %vm211_vm0, %v209_v2, -inf  ;;  %v210_v21 = vld [vmem:[%s197_s20] sm:$0x3]  ;;  %s202_s24 = scalar_lea.vmem %s573_s2, %s430_s21 }
  0x11   : > { %v213_v5 = vrot.slane %v212_v3, 4  ;;  %v220_v6 = vrot.slane %v219_v4, 4  ;;  %vm262_vm1 = vcmp.ne.s32.totalorder %v210_v21, 255  ;;  %v267_v27 = vperm.slane %v210_v21, 0 }
  0x12   : > { %v268_v28 = vperm.slane %v210_v21, 1  ;;  %v431_v33 = vsel %vm262_vm1, 1.0, %v496_v0 }
  0x13   : > { %v214_v7 = vmax.f32 %v212_v3, %v213_v5  ;;  %v221_v8 = vmax.f32 %v219_v4, %v220_v6  ;;  %vm269_vm2 = vcmp.eq.s32.totalorder %v267_v27, %v266_v26  ;;  %v274_v37 = vperm.slane %v431_v33, 0 }
  0x14   : > { %vm270_vm3 = vcmp.eq.s32.totalorder %v268_v28, %v266_v26  ;;  %v275_v38 = vperm.slane %v431_v33, 1  ;;  %v271_v40 = vsel %vm269_vm2, 1.0, %v496_v0  ;;  %v315_v26 = vld [vmem:[#allocation2] sm:$0x3f] }
  0x15   : > { %v215_v9 = vrot.slane %v214_v7, 2  ;;  %v222_v10 = vrot.slane %v221_v8, 2  ;;  %v272_v41 = vsel %vm270_vm3, 1.0, %v496_v0  ;;  %v278_v45 = vmul.f32 %v274_v37, %v271_v40 }
  0x16   : > { %v279_v46 = vmul.f32 %v275_v38, %v272_v41 }
  0x17   : > { %v216_v11 = vmax.f32 %v214_v7, %v215_v9  ;;  %v223_v12 = vmax.f32 %v221_v8, %v222_v10  ;;  %v296_v49 = vsel %vm211_vm0, %v278_v45, 0.0 }
  0x18   : > { %v297_v50 = vsel %vm211_vm0, %v279_v46, 0.0 }
  0x19   : > { %v217_v13 = vrot.slane %v216_v11, 1  ;;  %v224_v14 = vrot.slane %v223_v12, 1  ;;  %v298_v51 = vadd.f32 %v297_v50, %v296_v49 }
  0x1b   : > { %v218_v15 = vmax.f32 %v216_v11, %v217_v13  ;;  %v225_v16 = vmax.f32 %v223_v12, %v224_v14  ;;  %299 = vadd.xlane.f32.xlu1 %v298_v51 }
  0x1d   : > { %v226_v17 = vsub.f32 %v208_v1, %v218_v15  ;;  %v538_v18 = vsub.f32 %v209_v2, %v225_v16 }
  0x1f   : > { %v228_v19 = vmul.f32 1.442695, %v226_v17  ;;  %v230_v20 = vmul.f32 1.442695, %v538_v18 }
  0x21   : > { %460 = vpow2.f32 %v228_v19 }
  0x22   : > { %462 = vpow2.f32 %v230_v20 }
  0x27   : > { %v461_v23 = vpop.eup %460 }
  0x28   : > { %v463_v24 = vpop.eup %462  ;;  %v232_v25 = vsel %vm211_vm0, %v461_v23, 0.0 }
  0x29   : > { %v233_v29 = vrot.slane %v232_v25, 4  ;;  %v239_v30 = vsel %vm211_vm0, %v463_v24, 0.0 }
  0x2a   : > { %v240_v31 = vrot.slane %v239_v30, 4 }
  0x2b   : > { %v234_v32 = vadd.f32 %v233_v29, %v232_v25 }
  0x2c   : > { %v241_v34 = vadd.f32 %v240_v31, %v239_v30 }
  0x2d   : > { %v235_v35 = vrot.slane %v234_v32, 2 }
  0x2e   : > { %v242_v36 = vrot.slane %v241_v34, 2 }
  0x2f   : > { %v236_v39 = vadd.f32 %v235_v35, %v234_v32 }
  0x30   : > { %v243_v42 = vadd.f32 %v242_v36, %v241_v34 }
  0x31   : > { %v237_v43 = vrot.slane %v236_v39, 1 }
  0x32   : > { %v244_v44 = vrot.slane %v243_v42, 1 }
  0x33   : > { %v238_v47 = vadd.f32 %v237_v43, %v236_v39 }
  0x34   : > { %v245_v48 = vadd.f32 %v244_v44, %v243_v42 }
  0x35   : > { %464 = vrcp.f32 %v238_v47 }
  0x36   : > { %466 = vrcp.f32 %v245_v48 }
  0x37   : > { %468 = vlog2.f32 %v238_v47 }
  0x38   : > { %470 = vlog2.f32 %v245_v48 }
  0x3b   : > { %v465_v52 = vpop.eup %464 }
  0x3c   : > { %v467_v53 = vpop.eup %466  ;;  %v254_v54 = vmul.f32 %v465_v52, %v238_v47 }
  0x3d   : > { %v469_v55 = vpop.eup %468  ;;  %v255_v56 = vmul.f32 %v467_v53, %v245_v48 }
  0x3e   : > { %v471_v57 = vpop.eup %470  ;;  %v256_v58 = vsub.f32 2.0, %v254_v54  ;;  %v247_v59 = vmul.f32 0.6931472, %v469_v55 }
  0x3f   : > { %v257_v60 = vsub.f32 2.0, %v255_v56  ;;  %v249_v61 = vmul.f32 0.6931472, %v471_v57 }
  0x40   : > { %v258_v62 = vmul.f32 %v465_v52, %v256_v58  ;;  %v250_v63 = vsub.f32 %v226_v17, %v247_v59 }
  0x41   : > { %v259_v0 = vmul.f32 %v467_v53, %v257_v60  ;;  %v251_v1 = vsub.f32 %v538_v18, %v249_v61 }
  0x42   : > { %v260_v2 = vmul.f32 %v461_v23, %v258_v62  ;;  %v280_v3 = vsub.f32 0.0, %v250_v63 }
  0x43   : > { %v261_v4 = vmul.f32 %v463_v24, %v259_v0  ;;  %v281_v5 = vsub.f32 0.0, %v251_v1 }
  0x44   : > { %v282_v6 = vmul.f32 %v274_v37, %v260_v2  ;;  %v301_v7 = vmul.f32 %v280_v3, %v278_v45  ;;  %v308_v8 = vmul.f32 %v280_v3, %v274_v37 }
  0x45   : > { %v283_v9 = vmul.f32 %v275_v38, %v261_v4  ;;  %v302_v10 = vmul.f32 %v281_v5, %v279_v46  ;;  %v309_v11 = vmul.f32 %v281_v5, %v275_v38 }
  0x46   : > { %v284_v12 = vmul.f32 %v282_v6, %v278_v45  ;;  %v303_v13 = vsel %vm211_vm0, %v301_v7, 0.0  ;;  %v310_v14 = vsel %vm211_vm0, %v308_v8, 0.0  ;;  %v291_v23 = vsel %vm211_vm0, %v282_v6, 0.0 }
  0x47   : > { %v285_v15 = vmul.f32 %v283_v9, %v279_v46  ;;  %v304_v16 = vsel %vm211_vm0, %v302_v10, 0.0  ;;  %v311_v17 = vsel %vm211_vm0, %v309_v11, 0.0  ;;  %v292_v24 = vsel %vm211_vm0, %v283_v9, 0.0 }
  0x48   : > { %v286_v18 = vsel %vm211_vm0, %v284_v12, 0.0  ;;  %v305_v19 = vadd.f32 %v304_v16, %v303_v13  ;;  %v312_v20 = vadd.f32 %v311_v17, %v310_v14  ;;  %v293_v25 = vadd.f32 %v292_v24, %v291_v23 }
  0x49   : > { %v287_v21 = vsel %vm211_vm0, %v285_v15, 0.0 }
  0x4a   : > { %v288_v22 = vadd.f32 %v287_v21, %v286_v18  ;;  %306 = vadd.xlane.f32.xlu1 %v305_v19  ;;  %313 = vadd.xlane.f32.xlu2 %v312_v20 }
  0x4c   : > { %289 = vadd.xlane.f32.xlu0 %v288_v22 }
  0x54   : > { %294 = vadd.xlane.f32.xlu0 %v293_v25 }
  0x8e   : > { %v300_v32 = vpop.xlane.xlu1 %299 }
  0xbd   : > { %v307_v35 = vpop.xlane.xlu1 %306  ;;  %v314_v38 = vpop.xlane.xlu2 %313 }
  0xbf   : > { %v290_v27 = vpop.xlane.xlu0 %289 }
  0xc0   : > { %v316_v28 = vadd.f32 %v315_v26, %v290_v27 }
  0xc2   : > { %318 = vst.msk [vmem:[#allocation2] sm:$0x3f] %vm317_vm4, %v316_v28 }
  0xc7   : > { %v295_v29 = vpop.xlane.xlu0 %294 }
  0xc9   : > { %v319_v30 = vld [vmem:[#allocation2] sm:$0x3f] }
  0xca   : > { %v320_v31 = vadd.f32 %v319_v30, %v295_v29 }
  0xcc   : > { %322 = vst.msk [vmem:[#allocation2] sm:$0x3f] %vm321_vm5, %v320_v31 }
  0xd3   : > { %v323_v33 = vld [vmem:[#allocation2] sm:$0x3f] }
  0xd4   : > { %v324_v34 = vadd.f32 %v323_v33, %v300_v32 }
  0xd6   : > { %326 = vst.msk [vmem:[#allocation2] sm:$0x3f] %vm325_vm6, %v324_v34 }
  0xdd   : > { %v327_v36 = vld [vmem:[#allocation2] sm:$0x3f] }
  0xde   : > { %v328_v37 = vadd.f32 %v327_v36, %v307_v35 }
  0xe0   : > { %330 = vst.msk [vmem:[#allocation2] sm:$0x3f] %vm329_vm7, %v328_v37 }
  0xe7   : > { %v331_v39 = vld [vmem:[#allocation2] sm:$0x3f] }
  0xe8   : > { %v332_v40 = vadd.f32 %v331_v39, %v314_v38 }
  0xea   : > { %334 = vst.msk [vmem:[#allocation2] sm:$0x3f] %vm333_vm8, %v332_v40 }
  0xf1   : > { %v338_v41 = vld [vmem:[#allocation2] sm:$0x3f] }
  0xf2   : > { %339 = vst [vmem:[%s202_s24] sm:$0x3f] %v338_v41 }
  0xf3 PF: > { %s12_s11 = sadd.s32 1, %s494_s11   ;;  %s574_s9 = smov %s490_s10 }
  0xf4   : > { %p9_p5 = scmp.ge.s32.totalorder %s12_s11, 4   ;;  %s575_s10 = smov %s577_s12 }
  0xf6   :  { %11 = sbr.rel (!%p9_p5) target bundleno = 2 (0x2), region = 69 }

</bundles_post_ra>
